<compile_context>
chip_gen: v7x
topology: tpu7x:2x2x1
jax: 0.10.0
libtpu: 0.0.40
codegen_flags: <defaults>
</compile_context>

<pallas_src>
from functools import partial

import jax
import jax.numpy as jnp
from jax import lax
from jax.experimental import pallas as pl
from jax.experimental.pallas import tpu as pltpu


def actor_kernel(obs_ref, w1_ref, b1_ref, w2_ref, b2_ref, w3_ref, b3_ref, out_t_ref):
    # encoder: identity. obs arrives in natural layout (tb, obs_dim).
    x = obs_ref[...]

    # torso layer 1: h1^T = W1 @ x^T  (transposition folded into the MXU dot_general,
    # batch lands on the lane axis). f32 accumulation.
    h1 = lax.dot_general(w1_ref[...], x, (((1,), (1,)), ((), ())),
                         preferred_element_type=jnp.float32)
    h1 = jnp.maximum(h1 + b1_ref[...], 0.0)            # f32 elementwise (v5e-safe)

    # torso layer 2: h2^T = W2 @ h1^T, ReLU
    h2 = jnp.dot(w2_ref[...], h1.astype(w2_ref.dtype),
                 preferred_element_type=jnp.float32)
    h2 = jnp.maximum(h2 + b2_ref[...], 0.0)

    # head: a^T = tanh(W3 @ h2^T + b3) -> lane-dense (action_size, tb) store
    a = jnp.dot(w3_ref[...], h2.astype(w3_ref.dtype),
                preferred_element_type=jnp.float32)
    out_t_ref[...] = jnp.tanh(a + b3_ref[...]).astype(out_t_ref.dtype)


def _round_up(x, m):
    return (x + m - 1) // m * m


def _vmem_limit_bytes(tb, obs_itemsize, out_itemsize, hidden):
    """Budget: double-buffered obs/out tiles (padded to the (8,128) VMEM tiling),
    f32 (hidden, tb) temporaries, weights, plus headroom."""
    lane_tb = _round_up(tb, 128)
    sub_tb = _round_up(tb, 8)
    obs_buf = sub_tb * 128 * obs_itemsize            # obs_dim <= 128 -> one lane-tile wide
    out_buf = 8 * lane_tb * out_itemsize             # act_dim <= 8 sublanes
    inter = 4 * _round_up(hidden, 8) * lane_tb * 4   # f32 intermediate slabs
    total = 2 * (obs_buf + out_buf) + inter + (8 << 20)
    return max(32 << 20, int(total))                 # <= ~35 MiB at the default tile


@partial(jax.jit, static_argnames=("block_batch", "out_dtype", "transposed_output"))
def actor_forward(obs, params, *, block_batch=16384, out_dtype=None,
                  transposed_output=False):
    """Fused Pallas Actor forward. params use torch layout: W (out, in), b (out,)."""
    w1, b1, w2, b2, w3, b3 = params
    batch, obs_dim = obs.shape
    act_dim = w3.shape[0]
    hidden = max(w1.shape[0], w2.shape[0])

    stream_dtype = obs.dtype                          # no wrapper-side obs cast / copy
    out_dtype = jnp.dtype(out_dtype) if out_dtype is not None else jnp.dtype(stream_dtype)

    # Tiny batches (< 1 lane-tile): pad to 128 rows (<8 KB copy) so lane widths are
    # sane; large batches stream copy-free with a ragged last tile.
    if batch < 128:
        padded = 128
        obs_in = jnp.pad(obs, ((0, padded - batch), (0, 0)))
    else:
        padded = batch
        obs_in = obs

    block_batch = _round_up(block_batch, 128)
    tb = min(block_batch, padded)                     # == padded -> single whole-array block
    grid = pl.cdiv(padded, tb)                        # ragged last tile is OOB-masked

    # Weights cast to the streaming dtype (~5 KB total); biases stay f32 columns.
    w1s, w2s, w3s = (w.astype(stream_dtype) for w in (w1, w2, w3))
    b1c, b2c, b3c = (b.astype(jnp.float32).reshape(-1, 1) for b in (b1, b2, b3))

    # Weights/biases: constant block index -> DMA'd once, VMEM-resident.
    resident = lambda shape: pl.BlockSpec(shape, lambda i: (0, 0))

    out_t = pl.pallas_call(
        actor_kernel,
        out_shape=jax.ShapeDtypeStruct((act_dim, padded), out_dtype),
        grid=(grid,),
        in_specs=[
            pl.BlockSpec((tb, obs_dim), lambda i: (i, 0)),   # natural-layout obs tiles
            resident(w1s.shape), resident(b1c.shape),
            resident(w2s.shape), resident(b2c.shape),
            resident(w3s.shape), resident(b3c.shape),
        ],
        out_specs=pl.BlockSpec((act_dim, tb), lambda i: (0, i)),
        compiler_params=pltpu.CompilerParams(
            # TODO(synk): on v7x, consider pltpu.CORE_PARALLEL / pl.core_map to
            # guarantee the batch grid is split across both TensorCores.
            dimension_semantics=("parallel",),
            vmem_limit_bytes=_vmem_limit_bytes(
                tb, jnp.dtype(stream_dtype).itemsize, out_dtype.itemsize, hidden),
        ),
    )(obs_in, w1s, b1c, w2s, b2c, w3s, b3c)

    if transposed_output:                             # (action_size, batch), zero post-ops
        return out_t if padded == batch else out_t[:, :batch]
    # Small (act_dim, batch) transpose back to the module's (batch, action_size).
    return out_t.T if padded == batch else out_t[:, :batch].T


def actor_ref(obs, params):
    """Pure-JAX reference of the same forward pass (torch-layout weights)."""
    w1, b1, w2, b2, w3, b3 = params
    h = jnp.maximum(obs @ w1.T + b1, 0.0)
    h = jnp.maximum(h @ w2.T + b2, 0.0)
    return jnp.tanh(h @ w3.T + b3)


def actor_forward_auto(obs, params, *, min_pallas_batch=1024, **kw):
    """Dispatch: small per-step batches go to plain XLA; batched eval uses Pallas."""
    if obs.shape[0] < min_pallas_batch:
        return actor_ref(obs, params)
    return actor_forward(obs, params, **kw)


def init_params(key, obs_dim, hidden, action_size):
    """Deterministic synthetic init, torch nn.Linear layout: W (out, in), b (out,)."""
    ks = jax.random.split(key, 6)

    def linear(kw_, kb_, fan_in, fan_out):
        bound = 1.0 / jnp.sqrt(fan_in)
        w = jax.random.uniform(kw_, (fan_out, fan_in), jnp.float32, -bound, bound)
        b = jax.random.uniform(kb_, (fan_out,), jnp.float32, -bound, bound)
        return w, b

    w1, b1 = linear(ks[0], ks[1], obs_dim, hidden)
    w2, b2 = linear(ks[2], ks[3], hidden, hidden)
    w3, b3 = linear(ks[4], ks[5], hidden, action_size)
    return (w1, b1, w2, b2, w3, b3)


if __name__ == "__main__":
    key = jax.random.PRNGKey(0)
    k_obs, k_params, k_big = jax.random.split(key, 3)

    batch, obs_dim, hidden, action_size = 2, 16, 32, 4
    obs = jax.random.normal(k_obs, (batch, obs_dim), dtype=jnp.float32)
    params = init_params(k_params, obs_dim, hidden, action_size)

    # Small-shape run of the Pallas kernel (single 128-row batch tile).
    out = jax.block_until_ready(actor_forward(obs, params))
    ref = actor_ref(obs, params)
    assert out.shape == (batch, action_size)
    assert jnp.allclose(out, ref, atol=2e-5, rtol=2e-5)

    # Copy-free streaming path: grid > 1 with a ragged last tile (1030 = 2*512 + 6).
    big_obs = jax.random.normal(k_big, (1030, obs_dim), dtype=jnp.float32)
    ref_big = actor_ref(big_obs, params)
    out_big = jax.block_until_ready(actor_forward(big_obs, params, block_batch=512))
    assert out_big.shape == (1030, action_size)
    assert jnp.allclose(out_big, ref_big, atol=2e-5, rtol=2e-5)

    # Auto dispatch (batch >= 1024 -> kernel): default 16K tile covers the whole batch.
    out_auto = jax.block_until_ready(actor_forward_auto(big_obs, params))
    assert jnp.allclose(out_auto, ref_big, atol=2e-5, rtol=2e-5)

    # bf16 streaming: hand the kernel bf16 observations directly (obs read + output
    # writeback halve); elementwise math and MXU accumulation stay f32 in-kernel.
    out_bf16 = jax.block_until_ready(actor_forward(big_obs.astype(jnp.bfloat16), params))
    assert out_bf16.dtype == jnp.bfloat16
    assert jnp.allclose(out_bf16.astype(jnp.float32), ref_big, atol=5e-2, rtol=5e-2)

    print("KERNEL_OK")
</pallas_src>

<mosaic_0001>
module attributes {stable_mosaic.version = 11 : i64} {
  func.func @actor_kernel(%arg0: i32, %arg1: memref<128x16xf32, #tpu.memory_space<vmem>>, %arg2: memref<32x16xf32, #tpu.memory_space<vmem>>, %arg3: memref<32x1xf32, #tpu.memory_space<vmem>>, %arg4: memref<32x32xf32, #tpu.memory_space<vmem>>, %arg5: memref<32x1xf32, #tpu.memory_space<vmem>>, %arg6: memref<4x32xf32, #tpu.memory_space<vmem>>, %arg7: memref<4x1xf32, #tpu.memory_space<vmem>>, %arg8: memref<4x128xf32, #tpu.memory_space<vmem>>) attributes {dimension_semantics = [#tpu.dimension_semantics<parallel>], iteration_bounds = array<i64: 1>, scalar_prefetch = 0 : i64, scratch_operands = 0 : i64, tpu.core_type = #tpu.core_type<tc>, window_params = [{transform_indices = @transform_0, window_bounds = array<i64: 128, 16>}, {pipeline_mode = #tpu.pipeline_mode<synchronous>, transform_indices = @transform_1, window_bounds = array<i64: 32, 16>}, {pipeline_mode = #tpu.pipeline_mode<synchronous>, transform_indices = @transform_2, window_bounds = array<i64: 32, 1>}, {pipeline_mode = #tpu.pipeline_mode<synchronous>, transform_indices = @transform_3, window_bounds = array<i64: 32, 32>}, {pipeline_mode = #tpu.pipeline_mode<synchronous>, transform_indices = @transform_4, window_bounds = array<i64: 32, 1>}, {pipeline_mode = #tpu.pipeline_mode<synchronous>, transform_indices = @transform_5, window_bounds = array<i64: 4, 32>}, {pipeline_mode = #tpu.pipeline_mode<synchronous>, transform_indices = @transform_6, window_bounds = array<i64: 4, 1>}, {transform_indices = @transform_7, window_bounds = array<i64: 4, 128>}]} {
    %c0 = arith.constant 0 : index
    %c0_0 = arith.constant 0 : index
    %0 = vector.load %arg1[%c0, %c0_0] : memref<128x16xf32, #tpu.memory_space<vmem>>, vector<128x16xf32>
    %c0_1 = arith.constant 0 : index
    %c0_2 = arith.constant 0 : index
    %1 = vector.load %arg2[%c0_1, %c0_2] : memref<32x16xf32, #tpu.memory_space<vmem>>, vector<32x16xf32>
    %cst = arith.constant dense<0.000000e+00> : vector<32x128xf32>
    %2 = tpu.matmul %1, %0, %cst {dimension_numbers = #tpu.dot_dimension_numbers<[1], [1], [0], [0], [0, 0, 1, 0], [], []>} : vector<32x16xf32>, vector<128x16xf32>, vector<32x128xf32> -> vector<32x128xf32>
    %c0_3 = arith.constant 0 : index
    %c0_4 = arith.constant 0 : index
    %3 = vector.load %arg3[%c0_3, %c0_4] : memref<32x1xf32, #tpu.memory_space<vmem>>, vector<32x1xf32>
    %4 = vector.broadcast %3 : vector<32x1xf32> to vector<32x128xf32>
    %5 = arith.addf %2, %4 : vector<32x128xf32>
    %cst_5 = arith.constant 0.000000e+00 : f32
    %6 = vector.broadcast %cst_5 : f32 to vector<32x128xf32>
    %7 = arith.maximumf %5, %6 : vector<32x128xf32>
    %c0_6 = arith.constant 0 : index
    %c0_7 = arith.constant 0 : index
    %8 = vector.load %arg4[%c0_6, %c0_7] : memref<32x32xf32, #tpu.memory_space<vmem>>, vector<32x32xf32>
    %cst_8 = arith.constant dense<0.000000e+00> : vector<32x128xf32>
    %9 = tpu.matmul %8, %7, %cst_8 {dimension_numbers = #tpu.dot_dimension_numbers<[1], [0], [0], [1], [0, 0, 1, 1], [], []>} : vector<32x32xf32>, vector<32x128xf32>, vector<32x128xf32> -> vector<32x128xf32>
    %c0_9 = arith.constant 0 : index
    %c0_10 = arith.constant 0 : index
    %10 = vector.load %arg5[%c0_9, %c0_10] : memref<32x1xf32, #tpu.memory_space<vmem>>, vector<32x1xf32>
    %11 = vector.broadcast %10 : vector<32x1xf32> to vector<32x128xf32>
    %12 = arith.addf %9, %11 : vector<32x128xf32>
    %cst_11 = arith.constant 0.000000e+00 : f32
    %13 = vector.broadcast %cst_11 : f32 to vector<32x128xf32>
    %14 = arith.maximumf %12, %13 : vector<32x128xf32>
    %c0_12 = arith.constant 0 : index
    %c0_13 = arith.constant 0 : index
    %15 = vector.load %arg6[%c0_12, %c0_13] : memref<4x32xf32, #tpu.memory_space<vmem>>, vector<4x32xf32>
    %cst_14 = arith.constant dense<0.000000e+00> : vector<4x128xf32>
    %16 = tpu.matmul %15, %14, %cst_14 {dimension_numbers = #tpu.dot_dimension_numbers<[1], [0], [0], [1], [0, 0, 1, 1], [], []>} : vector<4x32xf32>, vector<32x128xf32>, vector<4x128xf32> -> vector<4x128xf32>
    %c0_15 = arith.constant 0 : index
    %c0_16 = arith.constant 0 : index
    %17 = vector.load %arg7[%c0_15, %c0_16] : memref<4x1xf32, #tpu.memory_space<vmem>>, vector<4x1xf32>
    %18 = vector.broadcast %17 : vector<4x1xf32> to vector<4x128xf32>
    %19 = arith.addf %16, %18 : vector<4x128xf32>
    %20 = math.tanh %19 : vector<4x128xf32>
    %c0_17 = arith.constant 0 : index
    %c0_18 = arith.constant 0 : index
    %21 = vector.load %arg8[%c0_17, %c0_18] : memref<4x128xf32, #tpu.memory_space<vmem>>, vector<4x128xf32>
    tpu.vector_store %arg8[%c0_17, %c0_18], %20 {strides = array<i32>} : memref<4x128xf32, #tpu.memory_space<vmem>>, vector<4x128xf32>,
    return
  }
  func.func @transform_0(%arg0: i32) -> (i32, i32) {
    %c0_i32 = arith.constant 0 : i32
    %c0_i32_0 = arith.constant 0 : i32
    return %arg0, %c0_i32 : i32, i32
  }
  func.func @transform_1(%arg0: i32) -> (i32, i32) {
    %c0_i32 = arith.constant 0 : i32
    %c0_i32_0 = arith.constant 0 : i32
    %c0_i32_1 = arith.constant 0 : i32
    return %c0_i32, %c0_i32_0 : i32, i32
  }
  func.func @transform_2(%arg0: i32) -> (i32, i32) {
    %c0_i32 = arith.constant 0 : i32
    %c0_i32_0 = arith.constant 0 : i32
    %c0_i32_1 = arith.constant 0 : i32
    return %c0_i32, %c0_i32_0 : i32, i32
  }
  func.func @transform_3(%arg0: i32) -> (i32, i32) {
    %c0_i32 = arith.constant 0 : i32
    %c0_i32_0 = arith.constant 0 : i32
    %c0_i32_1 = arith.constant 0 : i32
    return %c0_i32, %c0_i32_0 : i32, i32
  }
  func.func @transform_4(%arg0: i32) -> (i32, i32) {
    %c0_i32 = arith.constant 0 : i32
    %c0_i32_0 = arith.constant 0 : i32
    %c0_i32_1 = arith.constant 0 : i32
    return %c0_i32, %c0_i32_0 : i32, i32
  }
  func.func @transform_5(%arg0: i32) -> (i32, i32) {
    %c0_i32 = arith.constant 0 : i32
    %c0_i32_0 = arith.constant 0 : i32
    %c0_i32_1 = arith.constant 0 : i32
    return %c0_i32, %c0_i32_0 : i32, i32
  }
  func.func @transform_6(%arg0: i32) -> (i32, i32) {
    %c0_i32 = arith.constant 0 : i32
    %c0_i32_0 = arith.constant 0 : i32
    %c0_i32_1 = arith.constant 0 : i32
    return %c0_i32, %c0_i32_0 : i32, i32
  }
  func.func @transform_7(%arg0: i32) -> (i32, i32) {
    %c0_i32 = arith.constant 0 : i32
    %c0_i32_0 = arith.constant 0 : i32
    return %c0_i32, %arg0 : i32, i32
  }
}

</mosaic_0001>

<bundles_post_ra>
// kernel: actor_forward.1
= control target key start
LH: loop header
LB: loop body
LE: loop exit
PB: predicated region body
PF: predicated region fallthrough
CT: control target
= control target key end

     0   :  { %vm70_vm0 = vcmask 130048   ;;  %v627_v3 = vmov 0   ;;  %vm248_vm2 = vcmask 261120   ;;  %v628_v61 = vmov 0.0|0.0   ;;  %s823_s0 = inlined_call_operand.vmem [shape: f32[128,16], index: 0, kind: input, shape index: {}]   ;;  %s824_s1 = inlined_call_operand.vmem [shape: f32[32,16], index: 1, kind: input, shape index: {}]   ;;  %s825_s2 = inlined_call_operand.vmem [shape: f32[32,1], index: 2, kind: input, shape index: {}]   ;;  %s826_s4 = inlined_call_operand.vmem [shape: f32[32,1], index: 4, kind: input, shape index: {}]   ;;  %s827_s6 = inlined_call_operand.vmem [shape: f32[4,1], index: 6, kind: input, shape index: {}]   ;;  %s828_s3 = inlined_call_operand.vmem [shape: f32[32,32], index: 3, kind: input, shape index: {}]   ;;  %s829_s5 = inlined_call_operand.vmem [shape: f32[4,32], index: 5, kind: input, shape index: {}]   ;;  %s830_s7 = inlined_call_operand.vmem [shape: f32[4,128], index: 7, kind: output, shape index: {}]  }
   0x1   :  { %v26_v0 = vld [vmem:[%s823_s0] sm:$0xff]  ;;  %v27_v1 = vld [vmem:[%s823_s0 + $0x8] sm:$0xff]  ;;  %vm679_vm1 = vmpackc.low %vm70_vm0, %vm70_vm0  ;;  %623 = vset.pattern.permute.xlu0 %v627_v3  ;;  %624 = vset.pattern.permute.xlu1 %v627_v3  ;;  %vm629_vm3 = vmmov 0   ;;  %v630_v62 = vmov 0.0  }
   0x2   :  { %v557_v4 = vpack.c.bf16 %v27_v1, %v26_v0  ;;  %v28_v5 = vld [vmem:[%s823_s0 + $0x10] sm:$0xff]  ;;  %v29_v6 = vld [vmem:[%s823_s0 + $0x18] sm:$0xff]  ;;  %v42_v8 = vld [vmem:[%s824_s1] sm:$0xff] }
   0x3   :  { %v563_v7 = vpack.c.bf16 %v29_v6, %v28_v5  ;;  %v30_v9 = vld [vmem:[%s823_s0 + $0x20] sm:$0xff]  ;;  %v31_v10 = vld [vmem:[%s823_s0 + $0x28] sm:$0xff]  ;;  %526 = vmatprep.mubr.msk.f32.mxu0 %vm70_vm0, %v42_v8  ;;  %v48_v12 = vld [vmem:[%s825_s2 + $0x10] sm:$0xff] }
   0x4   :  { %559 = vmatprep.subr.msk.bf16.mxu0 %vm679_vm1, %v557_v4  ;;  %v46_v11 = vld [vmem:[%s825_s2] sm:$0xff]  ;;  %62 = vperm.xlu1 %624, %v48_v12   ;;  %v569_v13 = vpack.c.bf16 %v31_v10, %v30_v9  ;;  %v47_v14 = vld [vmem:[%s825_s2 + $0x8] sm:$0xff]  ;;  %v49_v15 = vld [vmem:[%s825_s2 + $0x18] sm:$0xff] }
   0x5   :  { %562 = vmatpush3.bf16.xpose.msk.msra.mxu0 %vm679_vm1, %v557_v4  ;;  %52 = vperm.xlu0 %623, %v46_v11   ;;  %v224_v16 = vld [vmem:[%s826_s4] sm:$0xff]  ;;  %v32_v17 = vld [vmem:[%s823_s0 + $0x30] sm:$0xff]  ;;  %v33_v18 = vld [vmem:[%s823_s0 + $0x38] sm:$0xff] }
   0x6   :  { %565 = vmatprep.subr.msk.bf16.mxu0 %vm679_vm1, %v563_v7  ;;  %v225_v19 = vld [vmem:[%s826_s4 + $0x8] sm:$0xff]  ;;  %v575_v20 = vpack.c.bf16 %v33_v18, %v32_v17  ;;  %v226_v21 = vld [vmem:[%s826_s4 + $0x10] sm:$0xff]  ;;  %v227_v22 = vld [vmem:[%s826_s4 + $0x18] sm:$0xff] }
   0x7   :  { %v351_v23 = vld [vmem:[%s827_s6] sm:$0xf]  ;;  %v35_v25 = vld [vmem:[%s823_s0 + $0x48] sm:$0xff]  ;;  %v36_v27 = vld [vmem:[%s823_s0 + $0x50] sm:$0xff] }
   0x8   :  { %67 = vperm.xlu1 %624, %v49_v15   ;;  %v34_v24 = vld [vmem:[%s823_s0 + $0x40] sm:$0xff]  ;;  %v37_v28 = vld [vmem:[%s823_s0 + $0x58] sm:$0xff]  ;;  %v39_v31 = vld [vmem:[%s823_s0 + $0x68] sm:$0xff] }
   0x9   :  { %57 = vperm.xlu0 %623, %v47_v14   ;;  %v581_v26 = vpack.c.bf16 %v35_v25, %v34_v24  ;;  %v587_v29 = vpack.c.bf16 %v37_v28, %v36_v27  ;;  %v38_v30 = vld [vmem:[%s823_s0 + $0x60] sm:$0xff]  ;;  %v40_v33 = vld [vmem:[%s823_s0 + $0x70] sm:$0xff]  ;;  %v41_v34 = vld [vmem:[%s823_s0 + $0x78] sm:$0xff] }
   0xa   :  { %v593_v32 = vpack.c.bf16 %v39_v31, %v38_v30  ;;  %v599_v35 = vpack.c.bf16 %v41_v34, %v40_v33  ;;  %v43_v36 = vld [vmem:[%s824_s1 + $0x8] sm:$0xff]  ;;  %v44_v37 = vld [vmem:[%s824_s1 + $0x10] sm:$0xff]  ;;  %v45_v38 = vld [vmem:[%s824_s1 + $0x18] sm:$0xff] }
   0xb   :  { %v220_v39 = vld [vmem:[%s828_s3] sm:$0xff]  ;;  %v221_v58 = vld [vmem:[%s828_s3 + $0x8] sm:$0xff]  ;;  %v222_v59 = vld [vmem:[%s828_s3 + $0x10] sm:$0xff] }
   0xc   :  { %235 = vperm.xlu1 %624, %v225_v19   ;;  %540 = vmatprep.mubr.msk.f32.mxu1 %vm248_vm2, %v220_v39  ;;  %v223_v60 = vld [vmem:[%s828_s3 + $0x18] sm:$0xff]  ;;  %v350_v17 = vld [vmem:[%s829_s5] sm:$0xf] }
   0xd   :  { %568 = vmatpush3.bf16.xpose.msk.msra.mxu0 %vm679_vm1, %v563_v7  ;;  %230 = vperm.xlu0 %623, %v224_v16  }
   0xe   :  { %571 = vmatprep.subr.msk.bf16.mxu0 %vm679_vm1, %v569_v13 }
  0x10   :  { %245 = vperm.xlu1 %624, %v227_v22  }
  0x11   :  { %240 = vperm.xlu0 %623, %v226_v21  }
  0x15   :  { %574 = vmatpush3.bf16.xpose.msk.msra.mxu0 %vm679_vm1, %v569_v13  ;;  %354 = vperm.xlu0 %623, %v351_v23  }
  0x16   :  { %577 = vmatprep.subr.msk.bf16.mxu0 %vm679_vm1, %v575_v20 }
  0x1d   :  { %580 = vmatpush3.bf16.xpose.msk.msra.mxu0 %vm679_vm1, %v575_v20 }
  0x1e   :  { %583 = vmatprep.subr.msk.bf16.mxu0 %vm679_vm1, %v581_v26 }
  0x25   :  { %586 = vmatpush3.bf16.xpose.msk.msra.mxu0 %vm679_vm1, %v581_v26 }
  0x26   :  { %589 = vmatprep.subr.msk.bf16.mxu0 %vm679_vm1, %v587_v29 }
  0x2d   :  { %592 = vmatpush3.bf16.xpose.msk.msra.mxu0 %vm679_vm1, %v587_v29 }
  0x2e   :  { %595 = vmatprep.subr.msk.bf16.mxu0 %vm679_vm1, %v593_v32 }
  0x35   :  { %598 = vmatpush3.bf16.xpose.msk.msra.mxu0 %vm679_vm1, %v593_v32 }
  0x36   :  { %601 = vmatprep.subr.msk.bf16.mxu0 %vm679_vm1, %v599_v35 }
  0x3d   :  { %604 = vmatpush3.bf16.xpose.msk.msra.mxu0 %vm679_vm1, %v599_v35 }
  0x44   :  { %527 = vmatmul.mubr.msk.f32.vlgmr.msra.gmra.mrb[0].mxu0 %vm70_vm0, %v43_v36 }
  0x45   :  { %529 = vmatprep.mubr.msk.f32.mxu0 %vm70_vm0, %v44_v37 }
  0x48   :  { %530 = vmatmul.mubr.msk.f32.gmra.mrb[2].mxu0 %vm70_vm0, %v45_v38 }
  0x83   :  { %v63_v41 = vpop.permute.xlu1 %62 }
  0x84   :  { %v53_v40 = vpop.permute.xlu0 %52 }
  0x87   :  { %v68_v48 = vpop.permute.xlu1 %67 }
  0x88   :  { %v58_v42 = vpop.permute.xlu0 %57 }
  0x8b   :  { %v236_v63 = vpop.permute.xlu1 %235 }
  0x8c   :  { %v231_v0 = vpop.permute.xlu0 %230 }
  0x8f   :  { %v246_v6 = vpop.permute.xlu1 %245 }
  0x90   :  { %v241_v9 = vpop.permute.xlu0 %240 }
  0x94   :  { %v355_v18 = vpop.permute.xlu0 %354 }
 0x117   :  { %v528_v43 = vpop.f32.mrb[0].mxu0 }
 0x118   :  { %v203_v44 = vadd.f32 %v528_v43, %v58_v42  ;;  %v197_v45 = vpop.f32.mrb[1].mxu0 }
 0x119   :  { %v198_v46 = vadd.f32 %v197_v45, %v53_v40 }
 0x11a   :  { %v217_v47 = vmax.f32 %v203_v44, 0.0 }
 0x11b   :  { %v216_v49 = vmax.f32 %v198_v46, 0.0  ;;  %v531_v50 = vpop.f32.mrb[2].mxu0 }
 0x11c   :  { %v213_v51 = vadd.f32 %v531_v50, %v68_v48  ;;  %v207_v52 = vpop.f32.mrb[3].mxu0 }
 0x11d   :  { %v208_v53 = vadd.f32 %v207_v52, %v63_v41  ;;  %v605_v54 = vpack.c.bf16 %v217_v47, %v216_v49 }
 0x11e   :  { %v219_v55 = vmax.f32 %v213_v51, 0.0 }
 0x11f   :  { %v218_v56 = vmax.f32 %v208_v53, 0.0  ;;  %606 = vmatprep.subr.bf16.mxu1 %v605_v54 }
 0x120   :  { %608 = vmatpush3.bf16.msra.mxu1 %v605_v54 }
 0x121   :  { %v609_v57 = vpack.c.bf16 %v219_v55, %v218_v56 }
 0x123   :  { %610 = vmatprep.subr.bf16.mxu1 %v609_v57 }
 0x124   :  { %612 = vmatpush3.bf16.msra.mxu1 %v609_v57 }
 0x125   :  { %613 = vmatprep.subr.bf16.mxu1 %v628_v61 }
 0x127   :  { %541 = vmatmul.mubr.msk.f32.vlgmr.msra.gmra.mrb[0].mxu1 %vm248_vm2, %v221_v58 }
 0x128   :  { %543 = vmatprep.mubr.msk.f32.mxu1 %vm248_vm2, %v222_v59 }
 0x12b   :  { %544 = vmatmul.mubr.msk.f32.gmra.mrb[2].mxu1 %vm248_vm2, %v223_v60 }
 0x12c   :  { %554 = vmatprep.mubr.msk.f32.mxu1 %vm629_vm3, %v630_v62 }
 0x1fa   :  { %v542_v1 = vpop.f32.mrb[0].mxu1 }
 0x1fb   :  { %v333_v2 = vadd.f32 %v542_v1, %v236_v63  ;;  %v327_v3 = vpop.f32.mrb[1].mxu1 }
 0x1fc   :  { %v328_v4 = vadd.f32 %v327_v3, %v231_v0 }
 0x1fd   :  { %v347_v5 = vmax.f32 %v333_v2, 0.0 }
 0x1fe   :  { %v346_v7 = vmax.f32 %v328_v4, 0.0  ;;  %v545_v8 = vpop.f32.mrb[2].mxu1 }
 0x1ff   :  { %v343_v10 = vadd.f32 %v545_v8, %v246_v6  ;;  %v337_v11 = vpop.f32.mrb[3].mxu1 }
 0x200   :  { %v614_v12 = vpack.c.bf16 %v347_v5, %v346_v7  ;;  %v338_v13 = vadd.f32 %v337_v11, %v241_v9 }
 0x201   :  { %v349_v14 = vmax.f32 %v343_v10, 0.0 }
 0x202   :  { %v348_v15 = vmax.f32 %v338_v13, 0.0  ;;  %615 = vmatpush3.bf16.msra.mxu1 %v614_v12 }
 0x203   :  { %616 = vmatprep.subr.bf16.mxu1 %v628_v61 }
 0x204   :  { %v617_v16 = vpack.c.bf16 %v349_v14, %v348_v15 }
 0x206   :  { %618 = vmatpush3.bf16.msra.mxu1 %v617_v16 }
 0x209   :  { %555 = vmatmul.mubr.msk.f32.vlgmr.msra.gmra.mrb[4].mxu1 %vm248_vm2, %v350_v17 }
 0x2dc   :  { %v426_v19 = vpop.f32.mrb[4].mxu1 }
 0x2dd   :  { %v427_v20 = vadd.f32 %v426_v19, %v355_v18  ;;  %v556_v21 = vpop.f32.mrb[5].mxu1 }
 0x2df   :  { %625 = vtanh.f32 %v427_v20 }
 0x2e9   :  { %v626_v22 = vpop.eup %625 }
 0x2ea   :  { %431 = vst [vmem:[%s830_s7] sm:$0xf] %v626_v22 }

</bundles_post_ra>
